<compile_context>
chip_gen: v5e
topology: v5e:2x2
jax: 0.10.0
libtpu: 0.0.40
codegen_flags: <defaults>
</compile_context>

<pallas_src>
import functools
import math

import jax
import jax.numpy as jnp
from jax import lax
from jax.experimental import pallas as pl
from jax.experimental.pallas import tpu as pltpu


def _round_up(x, m):
    return ((x + m - 1) // m) * m


def _fold_bn(gamma, beta, running_mean, running_var, eps=1e-5):
    scale = gamma / jnp.sqrt(running_var + eps)
    shift = beta - running_mean * scale
    return scale.reshape(1, -1), shift.reshape(1, -1)


def _vmem_limit_bytes():
    cap = 128 * 1024 * 1024
    try:
        cap = int(getattr(pltpu.get_tpu_info(), "vmem_capacity_bytes", cap))
    except Exception:
        pass
    # ~20% headroom for compiler-internal scratch: ~51 MiB on v7x (64), ~102 MiB on v5e/v6e (128)
    return max(32 * 1024 * 1024, int(cap * 0.8))


# ---------------- fused kernel (grid = (phase, row_tile)) ----------------

def _gin_kernel(adj_ref, x_ref, w1a_ref, wstk_ref, vec_ref, wl2_ref, bl2_ref,
                o_ref, h_scr, pooled_scr, *, self1, self2, n_real, tm):
    p = pl.program_id(0)            # 0 = conv1, 1 = conv2 + pool + head
    i = pl.program_id(1)            # row tile
    n_tiles = pl.num_programs(1)
    row0 = pl.multiple_of(i * tm, tm)
    d = wstk_ref.shape[1]           # hidden dim (weight slab is (4*d, d))

    adj_tile = adj_ref[...]         # (tm, Np) bf16; adj[i,j] = #edges j->i, diag = 1+eps1

    @pl.when((p == 0) & (i == 0))
    def _init():
        pooled_scr[...] = jnp.zeros_like(pooled_scr)

    # ---------------- phase 0: conv1 on one row tile ----------------
    @pl.when(p == 0)
    def _conv1():
        # neighbor aggregation; (1+eps1) self term already folded onto adj diagonal
        agg = jnp.dot(adj_tile, x_ref[...], preferred_element_type=jnp.float32)
        if self1 != 0.0:   # static; dead by default
            agg = agg + self1 * x_ref[pl.ds(row0, tm), :].astype(jnp.float32)
        # Linear(in,dim) with eval-BN folded into W / shift, then ReLU
        h = jnp.dot(agg, w1a_ref[...], preferred_element_type=jnp.float32) + vec_ref[0:1, :]
        h = jnp.maximum(h, 0.0)
        # Linear(dim,dim) + ReLU
        h = jnp.dot(h, wstk_ref[0 * d:1 * d, :],
                    preferred_element_type=jnp.float32) + vec_ref[1:2, :]
        h = jnp.maximum(h, 0.0)
        h_scr[pl.ds(row0, tm), :] = h            # keep conv1 output VMEM-resident

    # ---------------- phase 1: conv2 + global_add_pool (+ head on last tile) -------
    @pl.when(p == 1)
    def _conv2():
        h_all = h_scr[...].astype(jnp.bfloat16)  # bf16 MXU operand, f32 accumulation
        agg = jnp.dot(adj_tile, h_all, preferred_element_type=jnp.float32)
        if self2 != 0.0:   # static; only when eps2 != eps1
            agg = agg + self2 * h_scr[pl.ds(row0, tm), :]
        h = jnp.dot(agg, wstk_ref[1 * d:2 * d, :],
                    preferred_element_type=jnp.float32) + vec_ref[2:3, :]
        h = jnp.maximum(h, 0.0)
        h = jnp.dot(h, wstk_ref[2 * d:3 * d, :],
                    preferred_element_type=jnp.float32) + vec_ref[3:4, :]
        h = jnp.maximum(h, 0.0)
        if n_real % tm != 0:                      # static: mask zero-padded node rows
            rows = row0 + lax.broadcasted_iota(jnp.int32, (tm, 1), 0)
            h = jnp.where(rows < n_real, h, 0.0)
        pooled_scr[...] = pooled_scr[...] + jnp.sum(h, axis=0, keepdims=True)

        @pl.when(i == n_tiles - 1)
        def _head():
            z = jnp.dot(pooled_scr[...], wstk_ref[3 * d:4 * d, :],
                        preferred_element_type=jnp.float32) + vec_ref[4:5, :]
            z = jnp.maximum(z, 0.0)
            o_ref[...] = jnp.dot(z, wl2_ref[...],
                                 preferred_element_type=jnp.float32) + bl2_ref[...]


# ---------------- wrapper ----------------

def gin_forward(params, x, edge_index, *, eps1=0.0, eps2=0.0):
    """Full GIN forward. x: (N, in_channels) f32, edge_index: (2, E) int32."""
    n, f = x.shape
    dim = params["w1b"].shape[1]
    out_ch = params["w_lin2"].shape[1]
    x = x.astype(jnp.float32)                    # mirrors `x = x.float()`

    # ---- fold eval-mode BatchNorm + Linear bias into the first Linear of each conv MLP
    s1, t1 = _fold_bn(params["bn1_gamma"], params["bn1_beta"],
                      params["bn1_mean"], params["bn1_var"])
    s2, t2 = _fold_bn(params["bn2_gamma"], params["bn2_beta"],
                      params["bn2_mean"], params["bn2_var"])
    w1a = params["w1a"] * s1                     # (F, dim), BN scale folded per column
    w2a = params["w2a"] * s2                     # (dim, dim)
    shift1 = params["b1a"] * s1 + t1             # (1, dim)
    shift2 = params["b2a"] * s2 + t2             # (1, dim)

    # ---- pack small params: one (4*dim, dim) weight slab + one (5, dim) vector slab
    wstk = jnp.concatenate([params["w1b"], w2a, params["w2b"], params["w_lin1"]], axis=0)
    vec = jnp.concatenate([shift1, params["b1b"], shift2, params["b2b"],
                           params["b_lin1"]], axis=0)

    # ---- row tiling of the node dimension (padded)
    tm = _round_up(n, 8) if n <= 512 else 256
    n_pad = _round_up(n, tm)
    n_tiles = n_pad // tm

    # ---- dense aggregation matrix, TRANSPOSED (rows = destinations), bf16,
    #      with the (1+eps1) self term folded onto the diagonal.
    #      (bf16 is exact for integer edge multiplicities up to 256.)
    #      NOTE: for static graphs this (and the param packing above) can be hoisted
    #      out of the per-call path and reused.
    adj = jnp.zeros((n_pad, n_pad), jnp.float32)
    adj = adj.at[edge_index[1], edge_index[0]].add(1.0)
    idx = jnp.arange(n)
    adj = adj.at[idx, idx].add(1.0 + eps1)
    adj = adj.astype(jnp.bfloat16)
    self1 = 0.0                                   # conv1 self term lives on the diagonal
    self2 = float(eps2) - float(eps1)             # conv2 correction on the shared diag

    x_pad = jnp.zeros((n_pad, f), jnp.bfloat16).at[:n].set(x.astype(jnp.bfloat16))

    flops = (2 * n_pad * n_pad * f + 2 * n_pad * f * dim + 2 * n_pad * dim * dim
             + 2 * n_pad * n_pad * dim + 4 * n_pad * dim * dim
             + 2 * dim * dim + 2 * dim * out_ch)
    bytes_accessed = (2 * (2 * n_pad * n_pad)            # adj read once per phase (bf16)
                      + 2 * n_pad * f                    # x (bf16)
                      + 4 * (f * dim + 4 * dim * dim + 5 * dim
                             + dim * out_ch + out_ch + out_ch))

    kernel = functools.partial(_gin_kernel, self1=self1, self2=self2, n_real=n, tm=tm)

    grid_spec = pltpu.PrefetchScalarGridSpec(
        num_scalar_prefetch=0,
        grid=(2, n_tiles),                               # (conv phase, row tile)
        in_specs=[
            pl.BlockSpec((tm, n_pad), lambda p, i: (i, 0)),       # adj row tiles (streamed)
            pl.BlockSpec((n_pad, f), lambda p, i: (0, 0)),        # x (resident)
            pl.BlockSpec((f, dim), lambda p, i: (0, 0)),          # conv1 first weight
            pl.BlockSpec((4 * dim, dim), lambda p, i: (0, 0)),    # packed dim x dim weights
            pl.BlockSpec((5, dim), lambda p, i: (0, 0)),          # packed bias/shift vectors
            pl.BlockSpec((dim, out_ch), lambda p, i: (0, 0)),     # lin2 weight
            pl.BlockSpec((1, out_ch), lambda p, i: (0, 0)),       # lin2 bias
        ],
        out_specs=pl.BlockSpec((1, out_ch), lambda p, i: (0, 0)),
        scratch_shapes=[
            pltpu.VMEM((n_pad, dim), jnp.float32),       # conv1 output, resident across phases
            pltpu.VMEM((1, dim), jnp.float32),           # global_add_pool accumulator
        ],
    )

    return pl.pallas_call(
        kernel,
        out_shape=jax.ShapeDtypeStruct((1, out_ch), jnp.float32),
        grid_spec=grid_spec,
        compiler_params=pltpu.CompilerParams(
            # conv2 tiles depend on the full conv1 output held in per-core scratch,
            # so both axes must stay sequential.
            dimension_semantics=("arbitrary", "arbitrary"),
            vmem_limit_bytes=_vmem_limit_bytes(),
        ),
        cost_estimate=pl.CostEstimate(flops=flops, transcendentals=0,
                                      bytes_accessed=bytes_accessed),
    )(adj, x_pad, w1a, wstk, vec, params["w_lin2"], params["b_lin2"])


# ---------------- pure-JAX f32 reference (sanity check) ----------------

def gin_reference(params, x, edge_index, *, eps1=0.0, eps2=0.0):
    n = x.shape[0]
    x = x.astype(jnp.float32)
    adj_t = jnp.zeros((n, n), jnp.float32).at[edge_index[1], edge_index[0]].add(1.0)
    s1, t1 = _fold_bn(params["bn1_gamma"], params["bn1_beta"],
                      params["bn1_mean"], params["bn1_var"])
    s2, t2 = _fold_bn(params["bn2_gamma"], params["bn2_beta"],
                      params["bn2_mean"], params["bn2_var"])
    hi = jax.lax.Precision.HIGHEST

    h = jnp.dot(adj_t, x, precision=hi) + (1.0 + eps1) * x
    h = jnp.dot(h, params["w1a"], precision=hi) + params["b1a"]
    h = jnp.maximum(h * s1 + t1, 0.0)
    h = jnp.maximum(jnp.dot(h, params["w1b"], precision=hi) + params["b1b"], 0.0)

    h = jnp.dot(adj_t, h, precision=hi) + (1.0 + eps2) * h
    h = jnp.dot(h, params["w2a"], precision=hi) + params["b2a"]
    h = jnp.maximum(h * s2 + t2, 0.0)
    h = jnp.maximum(jnp.dot(h, params["w2b"], precision=hi) + params["b2b"], 0.0)

    pooled = jnp.sum(h, axis=0, keepdims=True)
    z = jnp.maximum(jnp.dot(pooled, params["w_lin1"], precision=hi) + params["b_lin1"], 0.0)
    return jnp.dot(z, params["w_lin2"], precision=hi) + params["b_lin2"]


# ---------------- deterministic parameter init (PyTorch-style) ----------------

def init_params(key, in_channels, dim, out_channels):
    ks = jax.random.split(key, 20)

    def uni(k, shape, fan_in):
        b = 1.0 / math.sqrt(fan_in)
        return jax.random.uniform(k, shape, jnp.float32, minval=-b, maxval=b)

    p = {}
    # conv1.nn: Linear(in_channels, dim) + bias ; Linear(dim, dim) + bias
    # weights stored pre-transposed as (in, out) so the kernel computes h @ W.
    p["w1a"] = uni(ks[0], (in_channels, dim), in_channels)
    p["b1a"] = uni(ks[1], (1, dim), in_channels)
    p["w1b"] = uni(ks[2], (dim, dim), dim)
    p["b1b"] = uni(ks[3], (1, dim), dim)
    p["bn1_gamma"] = 1.0 + 0.1 * jax.random.normal(ks[4], (dim,), jnp.float32)
    p["bn1_beta"] = 0.1 * jax.random.normal(ks[5], (dim,), jnp.float32)
    p["bn1_mean"] = 0.1 * jax.random.normal(ks[6], (dim,), jnp.float32)
    p["bn1_var"] = 1.0 + 0.1 * jax.random.uniform(ks[7], (dim,), jnp.float32)

    p["w2a"] = uni(ks[8], (dim, dim), dim)
    p["b2a"] = uni(ks[9], (1, dim), dim)
    p["w2b"] = uni(ks[10], (dim, dim), dim)
    p["b2b"] = uni(ks[11], (1, dim), dim)
    p["bn2_gamma"] = 1.0 + 0.1 * jax.random.normal(ks[12], (dim,), jnp.float32)
    p["bn2_beta"] = 0.1 * jax.random.normal(ks[13], (dim,), jnp.float32)
    p["bn2_mean"] = 0.1 * jax.random.normal(ks[14], (dim,), jnp.float32)
    p["bn2_var"] = 1.0 + 0.1 * jax.random.uniform(ks[15], (dim,), jnp.float32)

    # head (multi_layer=True): lin1: Linear(dim, dim), lin2: Linear(dim, out_channels)
    p["w_lin1"] = uni(ks[16], (dim, dim), dim)
    p["b_lin1"] = uni(ks[17], (1, dim), dim)
    p["w_lin2"] = uni(ks[18], (dim, out_channels), dim)
    p["b_lin2"] = uni(ks[19], (1, out_channels), dim)
    return p


if __name__ == "__main__":
    key = jax.random.PRNGKey(0)
    N, IN_CH, DIM, OUT_CH = 16, 32, 32, 8

    kx, kp = jax.random.split(key)
    x = jax.random.normal(kx, (N, IN_CH), jnp.float32)

    # deterministic symmetric ring graph: 2N directed edges
    src = jnp.arange(N, dtype=jnp.int32)
    dst = (src + 1) % N
    edge_index = jnp.stack(
        [jnp.concatenate([src, dst]), jnp.concatenate([dst, src])], axis=0
    )  # (2, 2N)

    params = init_params(kp, IN_CH, DIM, OUT_CH)

    out = gin_forward(params, x, edge_index)
    out = jax.block_until_ready(out)
    assert out.shape == (1, OUT_CH) and out.dtype == jnp.float32

    ref = jax.block_until_ready(gin_reference(params, x, edge_index))
    assert jnp.allclose(out, ref, rtol=2e-2, atol=2e-2), (out, ref)

    print("KERNEL_OK")
</pallas_src>

<mosaic_0001>
module attributes {stable_mosaic.version = 11 : i64} {
  func.func @_gin_kernel(%arg0: i32, %arg1: i32, %arg2: memref<16x16xbf16, #tpu.memory_space<vmem>>, %arg3: memref<16x32xbf16, #tpu.memory_space<vmem>>, %arg4: memref<32x32xf32, #tpu.memory_space<vmem>>, %arg5: memref<128x32xf32, #tpu.memory_space<vmem>>, %arg6: memref<5x32xf32, #tpu.memory_space<vmem>>, %arg7: memref<32x8xf32, #tpu.memory_space<vmem>>, %arg8: memref<1x8xf32, #tpu.memory_space<vmem>>, %arg9: memref<1x8xf32, #tpu.memory_space<vmem>>, %arg10: memref<16x32xf32, #tpu.memory_space<vmem>>, %arg11: memref<1x32xf32, #tpu.memory_space<vmem>>) attributes {dimension_semantics = [#tpu.dimension_semantics<arbitrary>, #tpu.dimension_semantics<arbitrary>], iteration_bounds = array<i64: 2, 1>, scalar_prefetch = 0 : i64, scratch_operands = 2 : i64, tpu.core_type = #tpu.core_type<tc>, window_params = [{transform_indices = @transform_0, window_bounds = array<i64: 16, 16>}, {pipeline_mode = #tpu.pipeline_mode<synchronous>, transform_indices = @transform_1, window_bounds = array<i64: 16, 32>}, {pipeline_mode = #tpu.pipeline_mode<synchronous>, transform_indices = @transform_2, window_bounds = array<i64: 32, 32>}, {pipeline_mode = #tpu.pipeline_mode<synchronous>, transform_indices = @transform_3, window_bounds = array<i64: 128, 32>}, {pipeline_mode = #tpu.pipeline_mode<synchronous>, transform_indices = @transform_4, window_bounds = array<i64: 5, 32>}, {pipeline_mode = #tpu.pipeline_mode<synchronous>, transform_indices = @transform_5, window_bounds = array<i64: 32, 8>}, {pipeline_mode = #tpu.pipeline_mode<synchronous>, transform_indices = @transform_6, window_bounds = array<i64: 1, 8>}, {pipeline_mode = #tpu.pipeline_mode<synchronous>, transform_indices = @transform_7, window_bounds = array<i64: 1, 8>}]} {
    %c16_i32 = arith.constant 16 : i32
    %0 = arith.muli %arg1, %c16_i32 : i32
    %1 = tpu.assume_multiple %0, 16 : i32
    %c0 = arith.constant 0 : index
    %c0_0 = arith.constant 0 : index
    %2 = vector.load %arg2[%c0, %c0_0] : memref<16x16xbf16, #tpu.memory_space<vmem>>, vector<16x16xbf16>
    %c0_i32 = arith.constant 0 : i32
    %3 = arith.cmpi eq, %arg0, %c0_i32 : i32
    %c0_i32_1 = arith.constant 0 : i32
    %4 = arith.cmpi eq, %arg1, %c0_i32_1 : i32
    %5 = arith.andi %3, %4 : i1
    %6 = arith.extui %5 : i1 to i32
    %c0_i32_2 = arith.constant 0 : i32
    %7 = arith.cmpi ne, %6, %c0_i32_2 : i32
    scf.if %7 {
      %cst = arith.constant 0.000000e+00 : f32
      %14 = vector.broadcast %cst : f32 to vector<1x32xf32>
      %c0_6 = arith.constant 0 : index
      %c0_7 = arith.constant 0 : index
      %15 = vector.load %arg11[%c0_6, %c0_7] : memref<1x32xf32, #tpu.memory_space<vmem>>, vector<1x32xf32>
      tpu.vector_store %arg11[%c0_6, %c0_7], %14 {strides = array<i32>} : memref<1x32xf32, #tpu.memory_space<vmem>>, vector<1x32xf32>,
    } else {
    }
    %c0_i32_3 = arith.constant 0 : i32
    %8 = arith.cmpi eq, %arg0, %c0_i32_3 : i32
    %9 = arith.extui %8 : i1 to i32
    %c0_i32_4 = arith.constant 0 : i32
    %10 = arith.cmpi ne, %9, %c0_i32_4 : i32
    scf.if %10 {
      %c0_6 = arith.constant 0 : index
      %c0_7 = arith.constant 0 : index
      %14 = vector.load %arg3[%c0_6, %c0_7] : memref<16x32xbf16, #tpu.memory_space<vmem>>, vector<16x32xbf16>
      %cst = arith.constant dense<0.000000e+00> : vector<16x32xf32>
      %15 = tpu.matmul %2, %14, %cst {dimension_numbers = #tpu.dot_dimension_numbers<[1], [0], [0], [1], [0, 0, 1, 1], [], []>} : vector<16x16xbf16>, vector<16x32xbf16>, vector<16x32xf32> -> vector<16x32xf32>
      %c0_8 = arith.constant 0 : index
      %c0_9 = arith.constant 0 : index
      %16 = vector.load %arg4[%c0_8, %c0_9] : memref<32x32xf32, #tpu.memory_space<vmem>>, vector<32x32xf32>
      %cst_10 = arith.constant dense<0.000000e+00> : vector<16x32xf32>
      %17 = tpu.matmul %15, %16, %cst_10 {dimension_numbers = #tpu.dot_dimension_numbers<[1], [0], [0], [1], [0, 0, 1, 1], [], []>} : vector<16x32xf32>, vector<32x32xf32>, vector<16x32xf32> -> vector<16x32xf32>
      %c0_11 = arith.constant 0 : index
      %c0_12 = arith.constant 0 : index
      %18 = vector.load %arg6[%c0_11, %c0_12] : memref<5x32xf32, #tpu.memory_space<vmem>>, vector<1x32xf32>
      %19 = vector.broadcast %18 : vector<1x32xf32> to vector<16x32xf32>
      %20 = arith.addf %17, %19 : vector<16x32xf32>
      %cst_13 = arith.constant 0.000000e+00 : f32
      %21 = vector.broadcast %cst_13 : f32 to vector<16x32xf32>
      %22 = arith.maximumf %20, %21 : vector<16x32xf32>
      %c0_14 = arith.constant 0 : index
      %c0_15 = arith.constant 0 : index
      %23 = vector.load %arg5[%c0_14, %c0_15] : memref<128x32xf32, #tpu.memory_space<vmem>>, vector<32x32xf32>
      %cst_16 = arith.constant dense<0.000000e+00> : vector<16x32xf32>
      %24 = tpu.matmul %22, %23, %cst_16 {dimension_numbers = #tpu.dot_dimension_numbers<[1], [0], [0], [1], [0, 0, 1, 1], [], []>} : vector<16x32xf32>, vector<32x32xf32>, vector<16x32xf32> -> vector<16x32xf32>
      %c1 = arith.constant 1 : index
      %c0_17 = arith.constant 0 : index
      %25 = vector.load %arg6[%c1, %c0_17] : memref<5x32xf32, #tpu.memory_space<vmem>>, vector<1x32xf32>
      %26 = vector.broadcast %25 : vector<1x32xf32> to vector<16x32xf32>
      %27 = arith.addf %24, %26 : vector<16x32xf32>
      %cst_18 = arith.constant 0.000000e+00 : f32
      %28 = vector.broadcast %cst_18 : f32 to vector<16x32xf32>
      %29 = arith.maximumf %27, %28 : vector<16x32xf32>
      %30 = arith.index_cast %1 : i32 to index
      %c0_19 = arith.constant 0 : index
      %31 = vector.load %arg10[%30, %c0_19] : memref<16x32xf32, #tpu.memory_space<vmem>>, vector<16x32xf32>
      tpu.vector_store %arg10[%30, %c0_19], %29 {strides = array<i32>} : memref<16x32xf32, #tpu.memory_space<vmem>>, vector<16x32xf32>,
    } else {
    }
    %c1_i32 = arith.constant 1 : i32
    %11 = arith.cmpi eq, %arg0, %c1_i32 : i32
    %12 = arith.extui %11 : i1 to i32
    %c0_i32_5 = arith.constant 0 : i32
    %13 = arith.cmpi ne, %12, %c0_i32_5 : i32
    scf.if %13 {
      %c0_6 = arith.constant 0 : index
      %c0_7 = arith.constant 0 : index
      %14 = vector.load %arg10[%c0_6, %c0_7] : memref<16x32xf32, #tpu.memory_space<vmem>>, vector<16x32xf32>
      %15 = arith.truncf %14 : vector<16x32xf32> to vector<16x32xbf16>
      %cst = arith.constant dense<0.000000e+00> : vector<16x32xf32>
      %16 = tpu.matmul %2, %15, %cst {dimension_numbers = #tpu.dot_dimension_numbers<[1], [0], [0], [1], [0, 0, 1, 1], [], []>} : vector<16x16xbf16>, vector<16x32xbf16>, vector<16x32xf32> -> vector<16x32xf32>
      %c32 = arith.constant 32 : index
      %c0_8 = arith.constant 0 : index
      %17 = vector.load %arg5[%c32, %c0_8] : memref<128x32xf32, #tpu.memory_space<vmem>>, vector<32x32xf32>
      %cst_9 = arith.constant dense<0.000000e+00> : vector<16x32xf32>
      %18 = tpu.matmul %16, %17, %cst_9 {dimension_numbers = #tpu.dot_dimension_numbers<[1], [0], [0], [1], [0, 0, 1, 1], [], []>} : vector<16x32xf32>, vector<32x32xf32>, vector<16x32xf32> -> vector<16x32xf32>
      %c2 = arith.constant 2 : index
      %c0_10 = arith.constant 0 : index
      %19 = vector.load %arg6[%c2, %c0_10] : memref<5x32xf32, #tpu.memory_space<vmem>>, vector<1x32xf32>
      %20 = vector.broadcast %19 : vector<1x32xf32> to vector<16x32xf32>
      %21 = arith.addf %18, %20 : vector<16x32xf32>
      %cst_11 = arith.constant 0.000000e+00 : f32
      %22 = vector.broadcast %cst_11 : f32 to vector<16x32xf32>
      %23 = arith.maximumf %21, %22 : vector<16x32xf32>
      %c64 = arith.constant 64 : index
      %c0_12 = arith.constant 0 : index
      %24 = vector.load %arg5[%c64, %c0_12] : memref<128x32xf32, #tpu.memory_space<vmem>>, vector<32x32xf32>
      %cst_13 = arith.constant dense<0.000000e+00> : vector<16x32xf32>
      %25 = tpu.matmul %23, %24, %cst_13 {dimension_numbers = #tpu.dot_dimension_numbers<[1], [0], [0], [1], [0, 0, 1, 1], [], []>} : vector<16x32xf32>, vector<32x32xf32>, vector<16x32xf32> -> vector<16x32xf32>
      %c3 = arith.constant 3 : index
      %c0_14 = arith.constant 0 : index
      %26 = vector.load %arg6[%c3, %c0_14] : memref<5x32xf32, #tpu.memory_space<vmem>>, vector<1x32xf32>
      %27 = vector.broadcast %26 : vector<1x32xf32> to vector<16x32xf32>
      %28 = arith.addf %25, %27 : vector<16x32xf32>
      %cst_15 = arith.constant 0.000000e+00 : f32
      %29 = vector.broadcast %cst_15 : f32 to vector<16x32xf32>
      %30 = arith.maximumf %28, %29 : vector<16x32xf32>
      %c0_16 = arith.constant 0 : index
      %c0_17 = arith.constant 0 : index
      %31 = vector.load %arg11[%c0_16, %c0_17] : memref<1x32xf32, #tpu.memory_space<vmem>>, vector<1x32xf32>
      %cst_18 = arith.constant dense<0.000000e+00> : vector<32xf32>
      %32 = vector.multi_reduction <add>, %30, %cst_18 [0] : vector<16x32xf32> to vector<32xf32>
      %33 = vector.shape_cast %32 : vector<32xf32> to vector<1x32xf32>
      %34 = arith.addf %31, %33 : vector<1x32xf32>
      %c0_19 = arith.constant 0 : index
      %c0_20 = arith.constant 0 : index
      %35 = vector.load %arg11[%c0_19, %c0_20] : memref<1x32xf32, #tpu.memory_space<vmem>>, vector<1x32xf32>
      tpu.vector_store %arg11[%c0_19, %c0_20], %34 {strides = array<i32>} : memref<1x32xf32, #tpu.memory_space<vmem>>, vector<1x32xf32>,
      %c0_i32_21 = arith.constant 0 : i32
      %36 = arith.cmpi eq, %arg1, %c0_i32_21 : i32
      %37 = arith.extui %36 : i1 to i32
      %c0_i32_22 = arith.constant 0 : i32
      %38 = arith.cmpi ne, %37, %c0_i32_22 : i32
      scf.if %38 {
        %c0_23 = arith.constant 0 : index
        %c0_24 = arith.constant 0 : index
        %39 = vector.load %arg11[%c0_23, %c0_24] : memref<1x32xf32, #tpu.memory_space<vmem>>, vector<1x32xf32>
        %c96 = arith.constant 96 : index
        %c0_25 = arith.constant 0 : index
        %40 = vector.load %arg5[%c96, %c0_25] : memref<128x32xf32, #tpu.memory_space<vmem>>, vector<32x32xf32>
        %cst_26 = arith.constant dense<0.000000e+00> : vector<1x32xf32>
        %41 = tpu.matmul %39, %40, %cst_26 {dimension_numbers = #tpu.dot_dimension_numbers<[1], [0], [0], [1], [0, 0, 1, 1], [], []>} : vector<1x32xf32>, vector<32x32xf32>, vector<1x32xf32> -> vector<1x32xf32>
        %c4 = arith.constant 4 : index
        %c0_27 = arith.constant 0 : index
        %42 = vector.load %arg6[%c4, %c0_27] : memref<5x32xf32, #tpu.memory_space<vmem>>, vector<1x32xf32>
        %43 = arith.addf %41, %42 : vector<1x32xf32>
        %cst_28 = arith.constant 0.000000e+00 : f32
        %44 = vector.broadcast %cst_28 : f32 to vector<1x32xf32>
        %45 = arith.maximumf %43, %44 : vector<1x32xf32>
        %c0_29 = arith.constant 0 : index
        %c0_30 = arith.constant 0 : index
        %46 = vector.load %arg7[%c0_29, %c0_30] : memref<32x8xf32, #tpu.memory_space<vmem>>, vector<32x8xf32>
        %cst_31 = arith.constant dense<0.000000e+00> : vector<1x8xf32>
        %47 = tpu.matmul %45, %46, %cst_31 {dimension_numbers = #tpu.dot_dimension_numbers<[1], [0], [0], [1], [0, 0, 1, 1], [], []>} : vector<1x32xf32>, vector<32x8xf32>, vector<1x8xf32> -> vector<1x8xf32>
        %c0_32 = arith.constant 0 : index
        %c0_33 = arith.constant 0 : index
        %48 = vector.load %arg8[%c0_32, %c0_33] : memref<1x8xf32, #tpu.memory_space<vmem>>, vector<1x8xf32>
        %49 = arith.addf %47, %48 : vector<1x8xf32>
        %c0_34 = arith.constant 0 : index
        %c0_35 = arith.constant 0 : index
        %50 = vector.load %arg9[%c0_34, %c0_35] : memref<1x8xf32, #tpu.memory_space<vmem>>, vector<1x8xf32>
        tpu.vector_store %arg9[%c0_34, %c0_35], %49 {strides = array<i32>} : memref<1x8xf32, #tpu.memory_space<vmem>>, vector<1x8xf32>,
      } else {
      }
    } else {
    }
    return
  }
  func.func @transform_0(%arg0: i32, %arg1: i32) -> (i32, i32) {
    %c0_i32 = arith.constant 0 : i32
    %c0_i32_0 = arith.constant 0 : i32
    return %arg1, %c0_i32 : i32, i32
  }
  func.func @transform_1(%arg0: i32, %arg1: i32) -> (i32, i32) {
    %c0_i32 = arith.constant 0 : i32
    %c0_i32_0 = arith.constant 0 : i32
    %c0_i32_1 = arith.constant 0 : i32
    return %c0_i32, %c0_i32_0 : i32, i32
  }
  func.func @transform_2(%arg0: i32, %arg1: i32) -> (i32, i32) {
    %c0_i32 = arith.constant 0 : i32
    %c0_i32_0 = arith.constant 0 : i32
    %c0_i32_1 = arith.constant 0 : i32
    return %c0_i32, %c0_i32_0 : i32, i32
  }
  func.func @transform_3(%arg0: i32, %arg1: i32) -> (i32, i32) {
    %c0_i32 = arith.constant 0 : i32
    %c0_i32_0 = arith.constant 0 : i32
    %c0_i32_1 = arith.constant 0 : i32
    return %c0_i32, %c0_i32_0 : i32, i32
  }
  func.func @transform_4(%arg0: i32, %arg1: i32) -> (i32, i32) {
    %c0_i32 = arith.constant 0 : i32
    %c0_i32_0 = arith.constant 0 : i32
    %c0_i32_1 = arith.constant 0 : i32
    return %c0_i32, %c0_i32_0 : i32, i32
  }
  func.func @transform_5(%arg0: i32, %arg1: i32) -> (i32, i32) {
    %c0_i32 = arith.constant 0 : i32
    %c0_i32_0 = arith.constant 0 : i32
    %c0_i32_1 = arith.constant 0 : i32
    return %c0_i32, %c0_i32_0 : i32, i32
  }
  func.func @transform_6(%arg0: i32, %arg1: i32) -> (i32, i32) {
    %c0_i32 = arith.constant 0 : i32
    %c0_i32_0 = arith.constant 0 : i32
    %c0_i32_1 = arith.constant 0 : i32
    return %c0_i32, %c0_i32_0 : i32, i32
  }
  func.func @transform_7(%arg0: i32, %arg1: i32) -> (i32, i32) {
    %c0_i32 = arith.constant 0 : i32
    %c0_i32_0 = arith.constant 0 : i32
    %c0_i32_1 = arith.constant 0 : i32
    return %c0_i32, %c0_i32_0 : i32, i32
  }
}

</mosaic_0001>

<bundles_post_ra>
// kernel: tpu_custom_call.1
= control target key start
LH: loop header
LB: loop body
LE: loop exit
PB: predicated region body
PF: predicated region fallthrough
CT: control target
= control target key end

     0   :  { %12 = vsyncpa [#allocation5], 0  ;;  %s823_s24 = smov 0   ;;  %s825_s25 = smov 0   ;;  %s986_s0 = inlined_call_operand.vmem [shape: bf16[16,16], index: 0, kind: input, shape index: {}]   ;;  %s987_s1 = inlined_call_operand.vmem [shape: bf16[16,32], index: 1, kind: input, shape index: {}]   ;;  %s988_s2 = inlined_call_operand.vmem [shape: f32[32,32], index: 2, kind: input, shape index: {}]   ;;  %s989_s3 = inlined_call_operand.vmem [shape: f32[128,32], index: 3, kind: input, shape index: {}]   ;;  %s990_s4 = inlined_call_operand.vmem [shape: f32[5,32], index: 4, kind: input, shape index: {}]   ;;  %s991_s5 = inlined_call_operand.vmem [shape: f32[32,8], index: 5, kind: input, shape index: {}]   ;;  %s992_s6 = inlined_call_operand.vmem [shape: f32[1,8], index: 6, kind: input, shape index: {}]   ;;  %s993_s7 = inlined_call_operand.hbm [shape: f32[1,8], index: 7, kind: output, shape index: {}]  }
   0x1   :  { %s827_s26 = smov 0  }
   0x2 LB: > { %s646_s27 = sadd.s32 4294967295, %s779_s26   ;;  %s30_s28 = sadd.s32 1, %s775_s25  ;;  %s779_s26 = sphi %s827_s26, %s18_s26   ;;  %s775_s25 = sphi %s825_s25, %s995_s25   ;;  %s771_s24 = sphi %s823_s24, %s994_s24  }
   0x3   : > { %p32_p0 = scmp.ge.s32.totalorder %s30_s28, 2  ;;  %p649_p1 = scmp.ge.s32.totalorder %s779_s26, 1 }
   0x4   : > { %p246_p2 = scmp.lt.s32.totalorder %s779_s26, 3 }
   0x5   : > { %s997_s28 = smov (%p32_p0, %s30_s28), 0 }
   0x6   : > { %p247_p3 = pnand %p649_p1, %p246_p2 }
   0x7   : > { %p283_p4 = scmp.eq.s32.totalorder (!%p247_p3), %s771_s24, 0 }
   0x8   : > { %250 = sbr.rel (%p247_p3) target bundleno = 1152 (0x480), region = 48 }
   0xd   : > { %v847_v0 = vld [vmem:[%s986_s0] sm:$0xf]  ;;  %v855_v2 = vld [vmem:[%s986_s0] sm:$0xf0]  ;;  %288 = sbr.rel (!%p283_p4) target bundleno = 18 (0x12), region = 52  ;;  %vm289_vm0 = vcmask (%p283_p4), 253952  }
   0xe   : > { %v654_v1 = vld [vmem:[%s986_s0] sm:$0xf]  ;;  %v682_v3 = vld [vmem:[%s986_s0] sm:$0xf0]  ;;  %v781_v4 = vmov (%p283_p4), 0.0  }
   0xf   : > { %290 = vst.msk [vmem:[#allocation3] sm:$0x1] (%p283_p4), %vm289_vm0, %v781_v4 }
  0x12 PF: > { %p651_p5 = scmp.ne.s32.totalorder %s771_s24, 0 }
  0x14   : > { %293 = sbr.rel (%p651_p5) target bundleno = 437 (0x1b5), region = 56 }
  0x19   : > { %v684_v5 = vld [vmem:[%s987_s1] sm:$0xff]  ;;  %v328_v6 = vld [vmem:[%s988_s2 + $0x18] sm:$0xff]  ;;  %v327_v7 = vld [vmem:[%s988_s2 + $0x10] sm:$0xff]  ;;  %v655_v8 = vor.u32 %v682_v3, %v654_v1  ;;  %vm307_vm1 = vcmask 130048   ;;  %vm331_vm2 = vcmask 261120  }
  0x1a   : > { %350 = vmatpush.msra.mxu1 %v328_v6  ;;  %685 = vmatpush.msra.mxu3 %v328_v6  ;;  %v326_v9 = vld [vmem:[%s988_s2 + $0x8] sm:$0xff]  ;;  %v325_v10 = vld [vmem:[%s988_s2] sm:$0xff]  ;;  %v366_v11 = vld [vmem:[%s989_s3 + $0x18] sm:$0xff] }
  0x1b   : > { %318 = vmatpush.bf16.msra.mxu0 %v684_v5  ;;  %387 = vmatpush.msra.mxu2 %v366_v11  ;;  %v365_v14 = vld [vmem:[%s989_s3 + $0x10] sm:$0xff]  ;;  %v364_v15 = vld [vmem:[%s989_s3 + $0x8] sm:$0xff]  ;;  %v363_v16 = vld [vmem:[%s989_s3] sm:$0xff] }
  0x1c   : > { %351 = vmatpush.msra.mxu1 %v327_v7  ;;  %686 = vmatpush.msra.mxu3 %v327_v7  ;;  %v721_v17 = vld [vmem:[%s990_s4] ss:$0 sm:$0xff]  ;;  %v722_v24 = vld [vmem:[%s990_s4 + $0x1] ss:$0 sm:$0xff] }
  0x1d   : > { %388 = vmatpush.msra.mxu2 %v365_v14 }
  0x1e   : > { %660 = vmatmul.msk.bf16.vlgmr.msra.gmra.mxu0 %vm307_vm1, %v655_v8  ;;  %352 = vmatpush.msra.mxu1 %v326_v9 }
  0x1f   : > { %687 = vmatpush.msra.mxu3 %v326_v9  ;;  %389 = vmatpush.msra.mxu2 %v364_v15 }
  0x20   : > { %353 = vmatpush.msra.mxu1 %v325_v10 }
  0x21   : > { %688 = vmatpush.msra.mxu3 %v325_v10  ;;  %390 = vmatpush.msra.mxu2 %v363_v16 }
  0x9b   : > { %v320_v12 = vpop.f32.mrf.mxu0 }
  0x9c   : > { %661 = vmatmul.msk.f32.vlgmr.msra.gmra.mxu1 %vm331_vm2, %v320_v12 }
  0xa3   : > { %v322_v13 = vpop.f32.mrf.mxu0 }
  0xa4   : > { %662 = vmatmul.msk.f32.vlgmr.msra.gmra.mxu3 %vm331_vm2, %v322_v13 }
 0x119   : > { %v355_v18 = vpop.f32.mrf.mxu1 }
 0x11a   : > { %v356_v19 = vadd.f32 %v721_v17, %v355_v18 }
 0x11c   : > { %v361_v20 = vmax.f32 %v356_v19, 0.0 }
 0x11e   : > { %663 = vmatmul.msk.f32.vlgmr.msra.gmra.mxu2 %vm331_vm2, %v361_v20 }
 0x127   : > { %v358_v21 = vpop.f32.mrf.mxu3 }
 0x128   : > { %v359_v22 = vadd.f32 %v721_v17, %v358_v21 }
 0x12a   : > { %v362_v23 = vmax.f32 %v359_v22, 0.0 }
 0x12c   : > { %664 = vmatmul.msk.f32.gmra.mxu2 %vm331_vm2, %v362_v23 }
 0x1a1   : > { %v392_v25 = vpop.f32.mrf.mxu2 }
 0x1a2   : > { %v393_v26 = vadd.f32 %v722_v24, %v392_v25 }
 0x1a4   : > { %v398_v27 = vmax.f32 %v393_v26, 0.0 }
 0x1a6   : > { %401 = vst.msk [vmem:[#allocation2] sm:$0xff] %vm331_vm2, %v398_v27 }
 0x1af   : > { %v395_v28 = vpop.f32.mrf.mxu2 }
 0x1b0   : > { %v396_v29 = vadd.f32 %v722_v24, %v395_v28 }
 0x1b2   : > { %v399_v30 = vmax.f32 %v396_v29, 0.0 }
 0x1b4   : > { %402 = vst.msk [vmem:[#allocation2 + $0x8] sm:$0xff] %vm331_vm2, %v399_v30 }
 0x1b5 PF: > { %p665_p6 = scmp.ne.s32.totalorder %s771_s24, 1 }
 0x1b7   : > { %406 = sbr.rel (%p665_p6) target bundleno = 1146 (0x47a), region = 60 }
 0x1bc   : > { %v407_v31 = vld [vmem:[#allocation2] sm:$0xff]  ;;  %v408_v32 = vld [vmem:[#allocation2 + $0x8] sm:$0xff]  ;;  %v436_v33 = vld [vmem:[%s989_s3 + $0x38] sm:$0xff]  ;;  %v669_v36 = vor.u32 %v855_v2, %v847_v0  ;;  %vm415_vm3 = vcmask 130048   ;;  %vm439_vm4 = vcmask 261120   ;;  %vm519_vm5 = vcmask 253952  }
 0x1bd   : > { %v409_v34 = vpack.c.bf16 %v408_v32, %v407_v31  ;;  %458 = vmatpush.msra.mxu1 %v436_v33  ;;  %v435_v35 = vld [vmem:[%s989_s3 + $0x30] sm:$0xff]  ;;  %v434_v37 = vld [vmem:[%s989_s3 + $0x28] sm:$0xff]  ;;  %v433_v38 = vld [vmem:[%s989_s3 + $0x20] sm:$0xff]  ;;  %vm582_vm6 = vcmask 57344  }
 0x1be   : > { %v474_v39 = vld [vmem:[%s989_s3 + $0x58] sm:$0xff]  ;;  %v473_v42 = vld [vmem:[%s989_s3 + $0x50] sm:$0xff]  ;;  %v472_v43 = vld [vmem:[%s989_s3 + $0x48] sm:$0xff] }
 0x1bf   : > { %426 = vmatpush.bf16.msra.mxu0 %v409_v34  ;;  %459 = vmatpush.msra.mxu1 %v435_v35  ;;  %v471_v44 = vld [vmem:[%s989_s3 + $0x40] sm:$0xff]  ;;  %v528_v52 = vld [vmem:[%s989_s3 + $0x78] sm:$0xff]  ;;  %v527_v53 = vld [vmem:[%s989_s3 + $0x70] sm:$0xff] }
 0x1c0   : > { %495 = vmatpush.msra.mxu2 %v474_v39  ;;  %v723_v45 = vld [vmem:[%s990_s4 + $0x2] ss:$0 sm:$0xff]  ;;  %545 = vmatpush.msra.mxu3 %v528_v52  ;;  %v526_v55 = vld [vmem:[%s989_s3 + $0x68] sm:$0xff]  ;;  %v724_v56 = vld [vmem:[%s990_s4 + $0x3] ss:$0 sm:$0xff] }
 0x1c1   : > { %460 = vmatpush.msra.mxu1 %v434_v37  ;;  %v525_v57 = vld [vmem:[%s989_s3 + $0x60] sm:$0xff]  ;;  %v557_v59 = vld [vmem:[%s991_s5 + $0x18] sm:$0xff]  ;;  %v556_v60 = vld [vmem:[%s991_s5 + $0x10] sm:$0xff] }
 0x1c2   : > { %670 = vmatmul.msk.bf16.vlgmr.msra.gmra.mxu0 %vm415_vm3, %v669_v36  ;;  %496 = vmatpush.msra.mxu2 %v473_v42  ;;  %v508_v9 = vld [vmem:[#allocation3] sm:$0x1]  ;;  %v555_v13 = vld [vmem:[%s991_s5 + $0x8] sm:$0xff]  ;;  %v554_v14 = vld [vmem:[%s991_s5] sm:$0xff] }
 0x1c3   : > { %461 = vmatpush.msra.mxu1 %v433_v38  ;;  %546 = vmatpush.msra.mxu3 %v527_v53  ;;  %v529_v15 = vld [vmem:[%s990_s4 + $0x4] sm:$0x1]  ;;  %v558_v19 = vld [vmem:[%s992_s6] sm:$0x1] }
 0x1c4   : > { %497 = vmatpush.msra.mxu2 %v472_v43 }
 0x1c5   : > { %547 = vmatpush.msra.mxu3 %v526_v55 }
 0x1c6   : > { %498 = vmatpush.msra.mxu2 %v471_v44 }
 0x1c7   : > { %548 = vmatpush.msra.mxu3 %v525_v57 }
 0x1c9   : > { %574 = vmatpush.msrb.mxu3 %v557_v59 }
 0x1cb   : > { %575 = vmatpush.msrb.mxu3 %v556_v60 }
 0x1cd   : > { %576 = vmatpush.msrb.mxu3 %v555_v13 }
 0x1cf   : > { %577 = vmatpush.msrb.mxu3 %v554_v14 }
 0x23f   : > { %v428_v40 = vpop.f32.mrf.mxu0 }
 0x240   : > { %671 = vmatmul.msk.f32.vlgmr.msra.gmra.mxu1 %vm439_vm4, %v428_v40 }
 0x247   : > { %v430_v41 = vpop.f32.mrf.mxu0 }
 0x248   : > { %672 = vmatmul.msk.f32.gmra.mxu1 %vm439_vm4, %v430_v41 }
 0x2bd   : > { %v463_v46 = vpop.f32.mrf.mxu1 }
 0x2be   : > { %v464_v47 = vadd.f32 %v723_v45, %v463_v46 }
 0x2c0   : > { %v469_v48 = vmax.f32 %v464_v47, 0.0 }
 0x2c2   : > { %673 = vmatmul.msk.f32.vlgmr.msra.gmra.mxu2 %vm439_vm4, %v469_v48 }
 0x2c5   : > { %v466_v49 = vpop.f32.mrf.mxu1 }
 0x2c6   : > { %v467_v50 = vadd.f32 %v723_v45, %v466_v49 }
 0x2c8   : > { %v470_v51 = vmax.f32 %v467_v50, 0.0 }
 0x2ca   : > { %674 = vmatmul.msk.f32.gmra.mxu2 %vm439_vm4, %v470_v51 }
 0x345   : > { %v500_v54 = vpop.f32.mrf.mxu2 }
 0x346   : > { %v501_v58 = vadd.f32 %v724_v56, %v500_v54 }
 0x348   : > { %v506_v62 = vmax.f32 %v501_v58, 0.0 }
 0x34a   : > { %v509_v1 = vsel %vm439_vm4, %v506_v62, 0.0 }
 0x34d   : > { %v503_v61 = vpop.f32.mrf.mxu2 }
 0x34e   : > { %v504_v63 = vadd.f32 %v724_v56, %v503_v61 }
 0x350   : > { %v507_v0 = vmax.f32 %v504_v63, 0.0 }
 0x352   : > { %v510_v2 = vsel %vm439_vm4, %v507_v0, 0.0 }
 0x353   : > { %v511_v3 = vadd.f32 %v510_v2, %v509_v1 }
 0x355   : > { %v512_v4 = vrot.slane %v511_v3, 4 }
 0x357   : > { %v513_v5 = vadd.f32 %v512_v4, %v511_v3 }
 0x359   : > { %v514_v6 = vrot.slane %v513_v5, 2 }
 0x35b   : > { %v515_v7 = vadd.f32 %v514_v6, %v513_v5 }
 0x35d   : > { %v516_v8 = vrot.slane %v515_v7, 1 }
 0x35f   : > { %v517_v10 = vadd.f32 %v516_v8, %v515_v7 }
 0x361   : > { %v518_v11 = vadd.f32 %v517_v10, %v508_v9 }
 0x363   : > { %520 = vst.msk [vmem:[#allocation3] sm:$0x1] %vm519_vm5, %v518_v11 }
 0x36a   : > { %v524_v12 = vld [vmem:[#allocation3] sm:$0x1] }
 0x36b   : > { %675 = vmatmul.msk.f32.vlgmr.msra.gmra.mxu3 %vm439_vm4, %v524_v12 }
 0x3ee   : > { %v550_v16 = vpop.f32.mrf.mxu3 }
 0x3ef   : > { %v551_v17 = vadd.f32 %v550_v16, %v529_v15 }
 0x3f1   : > { %v553_v18 = vmax.f32 %v551_v17, 0.0 }
 0x3f3   : > { %676 = vmatmul.msk.f32.vlgmr.msrb.gmra.mxu3 %vm439_vm4, %v553_v18 }
 0x476   : > { %v579_v20 = vpop.f32.mrf.mxu3 }
 0x477   : > { %v580_v21 = vadd.f32 %v579_v20, %v558_v19 }
 0x479   : > { %583 = vst.msk [vmem:[#allocation4] sm:$0x1] %vm582_vm6, %v580_v21 }
 0x47a PF: > { %p693_p7 = scmp.eq.s32.totalorder %s646_s27, 1  ;;  %s592_s22 = sshll.u32 %s993_s7, 4  ;;  %s593_s22 = int_to_ptr.hbm [resolvable:$true] %s592_s22 }
 0x47b   : > { %s782_s23 = smov [#allocation4]  }
 0x47c   : > { %s590_s24 = sshll.u32 %s782_s23, 4  ;;  %s591_s24 = int_to_ptr.vmem [resolvable:$true] %s590_s24 }
 0x47d   : > { %690 = dma.vmem_to_hbm [thread:$0]  (%p693_p7), %s591_s24, 16, %s593_s22, [#allocation5]  }
 0x47e   : > { %766 = dma.done.wait (%p693_p7), [#allocation5], 16  }
 0x47f   : > { %768 = vsyncadd (%p693_p7), [#allocation5], 4294967280 }
 0x480 PF: > { %s18_s26 = sadd.s32 1, %s779_s26   ;;  %s994_s24 = smov %s775_s25 }
 0x481   : > { %p15_p8 = scmp.ge.s32.totalorder %s18_s26, 4   ;;  %s995_s25 = smov %s997_s28 }
 0x483   :  { %17 = sbr.rel (!%p15_p8) target bundleno = 2 (0x2), region = 92 }
 0x488   :  { %606 = vsyncpa [#allocation5], 1 }
 0x489   :  { %608 = vsyncpa [#allocation5 + $0x1], 1 }

</bundles_post_ra>
